<compile_context>
chip_gen: v6e
topology: v6e:2x2x1
jax: 0.10.0
libtpu: 0.0.40
codegen_flags: <defaults>
</compile_context>

<pallas_src>
import jax
import jax.numpy as jnp
from jax.experimental import pallas as pl
from jax.experimental.pallas import tpu as pltpu

IN1, OUT1 = 400, 256
IN2, OUT2 = 256, 7

N_PAD = 8          # 7 -> 8: tiny, keeps BlockSpec legal (full last dim), 16x less writeback than 128
TILE_B_MAX = 4096  # f32 x tile = 6.25 MiB, x2 buffers = 12.5 MiB -> fits 32 MiB scoped VMEM on all gens


def _round_up(n, m):
    return ((n + m - 1) // m) * m


def mlp_kernel(x_ref, w1_ref, b1_ref, w2_ref, b2_ref, o_ref):
    # x arrives f32 from HBM; cast to bf16 in-kernel (VPU has slack in this
    # HBM-bound kernel), avoiding a separate wrapper-side cast pass over x.
    x = x_ref[...].astype(jnp.bfloat16)
    # Layer 1: (tile_b,400)bf16 @ (400,256)bf16 -> f32 acc; bias + ReLU in f32.
    h = jnp.dot(x, w1_ref[...], preferred_element_type=jnp.float32)
    h = jnp.maximum(h + b1_ref[...], 0.0)
    # Layer 2: cast activation to bf16 for the MXU; (tile_b,256) @ (256,8) -> f32.
    o = jnp.dot(h.astype(jnp.bfloat16), w2_ref[...],
                preferred_element_type=jnp.float32)
    o = jnp.maximum(o + b2_ref[...], 0.0)
    o_ref[...] = o


def linear_net_forward(x, w1_t, b1, w2_t, b2):
    """x: (B, 400) f32; w1_t: (400, 256); b1: (256,); w2_t: (256, 7); b2: (7,)."""
    B = x.shape[0]

    # Aim for >=4 grid steps (v7x megacore + double-buffering), rows in
    # multiples of 16 (bf16 sublane packing), capped by the VMEM budget.
    tile_b = min(TILE_B_MAX, _round_up(pl.cdiv(B, 4), 16))
    b_pad = _round_up(B, tile_b)

    # Batch-pad x only if needed (padded rows compute ReLU(bias) garbage and
    # are sliced off below). K stays at its natural 400 -- no padding.
    x_p = x if b_pad == B else jnp.zeros((b_pad, IN1), x.dtype).at[:B].set(x)

    # Weights are tiny and DMA'd once per call: cast to bf16 and pad the
    # second layer's output dim 7 -> 8 (padded column is exactly ReLU(0)=0).
    w1_p = w1_t.astype(jnp.bfloat16)
    b1_p = b1.astype(jnp.float32).reshape(1, OUT1)
    w2_p = jnp.zeros((IN2, N_PAD), jnp.bfloat16).at[:, :OUT2].set(
        w2_t.astype(jnp.bfloat16))
    b2_p = jnp.zeros((1, N_PAD), jnp.float32).at[0, :OUT2].set(
        b2.astype(jnp.float32))

    flops = 2 * b_pad * (IN1 * OUT1 + OUT1 * OUT2)
    bytes_accessed = (b_pad * (IN1 * 4 + N_PAD * 4)        # x in, out writeback
                      + IN1 * OUT1 * 2 + IN2 * N_PAD * 2   # weights (bf16)
                      + (OUT1 + N_PAD) * 4)                # biases (f32)

    grid = (b_pad // tile_b,)
    out_padded = pl.pallas_call(
        mlp_kernel,
        out_shape=jax.ShapeDtypeStruct((b_pad, N_PAD), jnp.float32),
        grid=grid,
        in_specs=[
            pl.BlockSpec((tile_b, IN1), lambda i: (i, 0)),   # x tile (pipelined)
            pl.BlockSpec((IN1, OUT1), lambda i: (0, 0)),     # w1: resident
            pl.BlockSpec((1, OUT1), lambda i: (0, 0)),       # b1: resident
            pl.BlockSpec((IN2, N_PAD), lambda i: (0, 0)),    # w2: resident
            pl.BlockSpec((1, N_PAD), lambda i: (0, 0)),      # b2: resident
        ],
        out_specs=pl.BlockSpec((tile_b, N_PAD), lambda i: (i, 0)),
        compiler_params=pltpu.CompilerParams(
            dimension_semantics=("parallel",),
            vmem_limit_bytes=32 * 1024 * 1024),
        cost_estimate=pl.CostEstimate(
            flops=flops, transcendentals=0, bytes_accessed=bytes_accessed),
    )(x_p, w1_p, b1_p, w2_p, b2_p)

    return out_padded[:B, :OUT2].astype(x.dtype)


def init_params(key):
    """Deterministic init matching PyTorch Linear's U(-1/sqrt(fan_in), ...) scale."""
    k1, k2, k3, k4 = jax.random.split(key, 4)
    bound1 = 1.0 / jnp.sqrt(jnp.float32(IN1))
    bound2 = 1.0 / jnp.sqrt(jnp.float32(IN2))
    # Stored as (in, out), i.e. transposed relative to PyTorch's (out, in).
    w1_t = jax.random.uniform(k1, (IN1, OUT1), jnp.float32, -bound1, bound1)
    b1 = jax.random.uniform(k2, (OUT1,), jnp.float32, -bound1, bound1)
    w2_t = jax.random.uniform(k3, (IN2, OUT2), jnp.float32, -bound2, bound2)
    b2 = jax.random.uniform(k4, (OUT2,), jnp.float32, -bound2, bound2)
    return w1_t, b1, w2_t, b2


if __name__ == "__main__":
    key = jax.random.PRNGKey(0)
    k_x, k_p = jax.random.split(key)

    batch = 8
    x = jax.random.normal(k_x, (batch, 400), jnp.float32)
    w1_t, b1, w2_t, b2 = init_params(k_p)

    out = linear_net_forward(x, w1_t, b1, w2_t, b2)
    out = jax.block_until_ready(out)
    assert out.shape == (batch, OUT2)

    # Reference with the same bf16 cast + f32 accumulation the kernel uses.
    xb = x.astype(jnp.bfloat16)
    w1b = w1_t.astype(jnp.bfloat16)
    w2b = w2_t.astype(jnp.bfloat16)
    h_ref = jnp.maximum(
        jnp.dot(xb, w1b, preferred_element_type=jnp.float32) + b1, 0.0)
    ref = jnp.maximum(
        jnp.dot(h_ref.astype(jnp.bfloat16), w2b,
                preferred_element_type=jnp.float32) + b2, 0.0)
    assert jnp.allclose(out, ref, atol=1e-2, rtol=1e-2)

    # Loose sanity check against the pure-f32 PyTorch-equivalent math.
    ref_f32 = jnp.maximum(jnp.maximum(x @ w1_t + b1, 0.0) @ w2_t + b2, 0.0)
    assert jnp.allclose(out, ref_f32, atol=5e-2, rtol=5e-2)

    print("KERNEL_OK")
</pallas_src>

<mosaic_0001>
module attributes {stable_mosaic.version = 11 : i64} {
  func.func @mlp_kernel(%arg0: i32, %arg1: memref<16x400xf32, #tpu.memory_space<vmem>>, %arg2: memref<400x256xbf16, #tpu.memory_space<vmem>>, %arg3: memref<1x256xf32, #tpu.memory_space<vmem>>, %arg4: memref<256x8xbf16, #tpu.memory_space<vmem>>, %arg5: memref<1x8xf32, #tpu.memory_space<vmem>>, %arg6: memref<16x8xf32, #tpu.memory_space<vmem>>) attributes {dimension_semantics = [#tpu.dimension_semantics<parallel>], iteration_bounds = array<i64: 1>, scalar_prefetch = 0 : i64, scratch_operands = 0 : i64, tpu.core_type = #tpu.core_type<tc>, window_params = [{transform_indices = @transform_0, window_bounds = array<i64: 16, 400>}, {pipeline_mode = #tpu.pipeline_mode<synchronous>, transform_indices = @transform_1, window_bounds = array<i64: 400, 256>}, {pipeline_mode = #tpu.pipeline_mode<synchronous>, transform_indices = @transform_2, window_bounds = array<i64: 1, 256>}, {pipeline_mode = #tpu.pipeline_mode<synchronous>, transform_indices = @transform_3, window_bounds = array<i64: 256, 8>}, {pipeline_mode = #tpu.pipeline_mode<synchronous>, transform_indices = @transform_4, window_bounds = array<i64: 1, 8>}, {transform_indices = @transform_5, window_bounds = array<i64: 16, 8>}]} {
    %c0 = arith.constant 0 : index
    %c0_0 = arith.constant 0 : index
    %0 = vector.load %arg1[%c0, %c0_0] : memref<16x400xf32, #tpu.memory_space<vmem>>, vector<16x400xf32>
    %1 = arith.truncf %0 : vector<16x400xf32> to vector<16x400xbf16>
    %c0_1 = arith.constant 0 : index
    %c0_2 = arith.constant 0 : index
    %2 = vector.load %arg2[%c0_1, %c0_2] : memref<400x256xbf16, #tpu.memory_space<vmem>>, vector<400x256xbf16>
    %cst = arith.constant dense<0.000000e+00> : vector<16x256xf32>
    %3 = tpu.matmul %1, %2, %cst {dimension_numbers = #tpu.dot_dimension_numbers<[1], [0], [0], [1], [0, 0, 1, 1], [], []>} : vector<16x400xbf16>, vector<400x256xbf16>, vector<16x256xf32> -> vector<16x256xf32>
    %c0_3 = arith.constant 0 : index
    %c0_4 = arith.constant 0 : index
    %4 = vector.load %arg3[%c0_3, %c0_4] : memref<1x256xf32, #tpu.memory_space<vmem>>, vector<1x256xf32>
    %5 = vector.broadcast %4 : vector<1x256xf32> to vector<16x256xf32>
    %6 = arith.addf %3, %5 : vector<16x256xf32>
    %cst_5 = arith.constant 0.000000e+00 : f32
    %7 = vector.broadcast %cst_5 : f32 to vector<16x256xf32>
    %8 = arith.maximumf %6, %7 : vector<16x256xf32>
    %9 = arith.truncf %8 : vector<16x256xf32> to vector<16x256xbf16>
    %c0_6 = arith.constant 0 : index
    %c0_7 = arith.constant 0 : index
    %10 = vector.load %arg4[%c0_6, %c0_7] : memref<256x8xbf16, #tpu.memory_space<vmem>>, vector<256x8xbf16>
    %cst_8 = arith.constant dense<0.000000e+00> : vector<16x8xf32>
    %11 = tpu.matmul %9, %10, %cst_8 {dimension_numbers = #tpu.dot_dimension_numbers<[1], [0], [0], [1], [0, 0, 1, 1], [], []>} : vector<16x256xbf16>, vector<256x8xbf16>, vector<16x8xf32> -> vector<16x8xf32>
    %c0_9 = arith.constant 0 : index
    %c0_10 = arith.constant 0 : index
    %12 = vector.load %arg5[%c0_9, %c0_10] : memref<1x8xf32, #tpu.memory_space<vmem>>, vector<1x8xf32>
    %13 = vector.broadcast %12 : vector<1x8xf32> to vector<16x8xf32>
    %14 = arith.addf %11, %13 : vector<16x8xf32>
    %cst_11 = arith.constant 0.000000e+00 : f32
    %15 = vector.broadcast %cst_11 : f32 to vector<16x8xf32>
    %16 = arith.maximumf %14, %15 : vector<16x8xf32>
    %c0_12 = arith.constant 0 : index
    %c0_13 = arith.constant 0 : index
    %17 = vector.load %arg6[%c0_12, %c0_13] : memref<16x8xf32, #tpu.memory_space<vmem>>, vector<16x8xf32>
    tpu.vector_store %arg6[%c0_12, %c0_13], %16 {strides = array<i32>} : memref<16x8xf32, #tpu.memory_space<vmem>>, vector<16x8xf32>,
    return
  }
  func.func @transform_0(%arg0: i32) -> (i32, i32) {
    %c0_i32 = arith.constant 0 : i32
    %c0_i32_0 = arith.constant 0 : i32
    return %arg0, %c0_i32 : i32, i32
  }
  func.func @transform_1(%arg0: i32) -> (i32, i32) {
    %c0_i32 = arith.constant 0 : i32
    %c0_i32_0 = arith.constant 0 : i32
    %c0_i32_1 = arith.constant 0 : i32
    return %c0_i32, %c0_i32_0 : i32, i32
  }
  func.func @transform_2(%arg0: i32) -> (i32, i32) {
    %c0_i32 = arith.constant 0 : i32
    %c0_i32_0 = arith.constant 0 : i32
    %c0_i32_1 = arith.constant 0 : i32
    return %c0_i32, %c0_i32_0 : i32, i32
  }
  func.func @transform_3(%arg0: i32) -> (i32, i32) {
    %c0_i32 = arith.constant 0 : i32
    %c0_i32_0 = arith.constant 0 : i32
    %c0_i32_1 = arith.constant 0 : i32
    return %c0_i32, %c0_i32_0 : i32, i32
  }
  func.func @transform_4(%arg0: i32) -> (i32, i32) {
    %c0_i32 = arith.constant 0 : i32
    %c0_i32_0 = arith.constant 0 : i32
    %c0_i32_1 = arith.constant 0 : i32
    return %c0_i32, %c0_i32_0 : i32, i32
  }
  func.func @transform_5(%arg0: i32) -> (i32, i32) {
    %c0_i32 = arith.constant 0 : i32
    %c0_i32_0 = arith.constant 0 : i32
    return %arg0, %c0_i32 : i32, i32
  }
}

</mosaic_0001>

<bundles_post_ra>
// kernel: tpu_custom_call.1
= control target key start
LH: loop header
LB: loop body
LE: loop exit
PB: predicated region body
PF: predicated region fallthrough
CT: control target
= control target key end

     0   :  { %10 = vsyncpa [#allocation3], 0  ;;  %s847_s18 = smov [#allocation2]   ;;  %s967_s0 = inlined_call_operand.vmem [shape: f32[16,400], index: 0, kind: input, shape index: {}]   ;;  %s968_s1 = inlined_call_operand.hbm [shape: bf16[400,256], index: 1, kind: input, shape index: {}]   ;;  %s969_s2 = inlined_call_operand.vmem [shape: f32[1,256], index: 2, kind: input, shape index: {}]   ;;  %s970_s3 = inlined_call_operand.vmem [shape: bf16[256,8], index: 3, kind: input, shape index: {}]   ;;  %s971_s4 = inlined_call_operand.vmem [shape: f32[1,8], index: 4, kind: input, shape index: {}]   ;;  %s972_s5 = inlined_call_operand.vmem [shape: f32[16,8], index: 5, kind: output, shape index: {}]  }
   0x1   :  { %s18_s19 = sshll.u32 %s847_s18, 4  ;;  %s19_s19 = int_to_ptr.vmem [resolvable:$true] %s18_s19 }
   0x2   :  { %s833_s20 = scalar_lea.vmem %s19_s19, 6400  ;;  %p838_p1 = scmp.lt.s32.totalorder %s19_s19, %s19_s19 }
   0x3   :  { %p834_p0 = scmp.ne.s32.totalorder %s19_s19, %s833_s20  ;;  %p839_p2 = scmp.lt.s32.totalorder %s833_s20, %s833_s20 }
   0x5   :  { %p840_p3 = por %p839_p2, %p838_p1 }
   0x7   :  { %p841_p4 = pnand %p840_p3, %p834_p0 }
   0x9   :  { %844 = shalt.err (!%p841_p4)
}
   0xa   :  { %s848_s21 = smov 128   ;;  %s849_s22 = smov 8  }
   0xb   :  { %24 = dma.hbm_to_vmem [thread:$0]  %s968_s1, 6400, %s19_s19, [#allocation3], %s848_s21, %s848_s21, %s849_s22  }
   0xc   :  { %845 = dma.done.wait [#allocation3], 6400  }
   0xd   :  { %846 = vsyncadd [#allocation3], 4294960896  ;;  %v734_v0 = vld [vmem:[#allocation2 + $0x74] ss:$8 sps:$4 sm:$0xff]   ;;  %v736_v1 = vld [vmem:[#allocation2 + $0x70] ss:$8 sps:$4 sm:$0xff]  }
   0xe   :  { %363 = vmatprep.subr.bf16.mxu0 %v734_v0  ;;  %v737_v2 = vld [vmem:[#allocation2 + $0x64] ss:$8 sps:$4 sm:$0xff]   ;;  %v739_v3 = vld [vmem:[#allocation2 + $0x60] ss:$8 sps:$4 sm:$0xff]   ;;  %v740_v4 = vld [vmem:[#allocation2 + $0x54] ss:$8 sps:$4 sm:$0xff]  }
   0xf   :  { %364 = vmatpush1.bf16.msra.mxu0 %v736_v1  ;;  %v742_v5 = vld [vmem:[#allocation2 + $0x50] ss:$8 sps:$4 sm:$0xff]   ;;  %v743_v6 = vld [vmem:[#allocation2 + $0x44] ss:$8 sps:$4 sm:$0xff]   ;;  %v754_v7 = vld [vmem:[#allocation2 + $0x174] ss:$8 sps:$4 sm:$0xff]  }
  0x10   :  { %365 = vmatprep.subr.bf16.mxu0 %v737_v2  ;;  %v757_v8 = vld [vmem:[#allocation2 + $0x170] ss:$8 sps:$4 sm:$0xff]   ;;  %v745_v9 = vld [vmem:[#allocation2 + $0x40] ss:$8 sps:$4 sm:$0xff]   ;;  %406 = vmatprep.subr.bf16.mxu1 %v754_v7  ;;  %v746_v10 = vld [vmem:[#allocation2 + $0x34] ss:$8 sps:$4 sm:$0xff]  }
  0x11   :  { %407 = vmatpush1.bf16.msra.mxu1 %v757_v8  ;;  %v760_v11 = vld [vmem:[#allocation2 + $0x164] ss:$8 sps:$4 sm:$0xff]   ;;  %v763_v12 = vld [vmem:[#allocation2 + $0x160] ss:$8 sps:$4 sm:$0xff]   ;;  %v748_v13 = vld [vmem:[#allocation2 + $0x30] ss:$8 sps:$4 sm:$0xff]  }
  0x12   :  { %408 = vmatprep.subr.bf16.mxu1 %v760_v11  ;;  %v749_v14 = vld [vmem:[#allocation2 + $0x24] ss:$8 sps:$4 sm:$0xff]   ;;  %v766_v15 = vld [vmem:[#allocation2 + $0x154] ss:$8 sps:$4 sm:$0xff]   ;;  %v769_v16 = vld [vmem:[#allocation2 + $0x150] ss:$8 sps:$4 sm:$0xff]  }
  0x13   :  { %366 = vmatpush1.bf16.msra.mxu0 %v739_v3  ;;  %v772_v17 = vld [vmem:[#allocation2 + $0x144] ss:$8 sps:$4 sm:$0xff]   ;;  %v751_v18 = vld [vmem:[#allocation2 + $0x20] ss:$8 sps:$4 sm:$0xff]   ;;  %v752_v19 = vld [vmem:[#allocation2 + $0x14] ss:$8 sps:$4 sm:$0xff]  }
  0x14   :  { %367 = vmatprep.subr.bf16.mxu0 %v740_v4  ;;  %v775_v20 = vld [vmem:[#allocation2 + $0x140] ss:$8 sps:$4 sm:$0xff]   ;;  %v778_v21 = vld [vmem:[#allocation2 + $0x134] ss:$8 sps:$4 sm:$0xff]   ;;  %v756_v22 = vld [vmem:[#allocation2 + $0x10] ss:$8 sps:$4 sm:$0xff]  }
  0x15   :  { %409 = vmatpush1.bf16.msra.mxu1 %v763_v12  ;;  %v758_v23 = vld [vmem:[#allocation2 + $0x4] ss:$8 sps:$4 sm:$0xff]   ;;  %v781_v24 = vld [vmem:[#allocation2 + $0x130] ss:$8 sps:$4 sm:$0xff]   ;;  %v762_v26 = vld [vmem:[#allocation2] ss:$8 sps:$4 sm:$0xff]  }
  0x16   :  { %410 = vmatprep.subr.bf16.mxu1 %v766_v15  ;;  %v784_v25 = vld [vmem:[#allocation2 + $0x124] ss:$8 sps:$4 sm:$0xff]   ;;  %v764_v27 = vld [vmem:[#allocation2 + $0xf4] ss:$8 sps:$4 sm:$0xff]   ;;  %v787_v28 = vld [vmem:[#allocation2 + $0x120] ss:$8 sps:$4 sm:$0xff]  }
  0x17   :  { %368 = vmatpush1.bf16.msra.mxu0 %v742_v5  ;;  %v790_v29 = vld [vmem:[#allocation2 + $0x114] ss:$8 sps:$4 sm:$0xff]   ;;  %v768_v30 = vld [vmem:[#allocation2 + $0xf0] ss:$8 sps:$4 sm:$0xff]   ;;  %v770_v31 = vld [vmem:[#allocation2 + $0xe4] ss:$8 sps:$4 sm:$0xff]  }
  0x18   :  { %369 = vmatprep.subr.bf16.mxu0 %v743_v6  ;;  %v793_v32 = vld [vmem:[#allocation2 + $0x110] ss:$8 sps:$4 sm:$0xff]   ;;  %vm359_vm0 = vcmask 130048   ;;  %v796_v35 = vld [vmem:[#allocation2 + $0x104] ss:$8 sps:$4 sm:$0xff]   ;;  %vm633_vm1 = vcmask 64512  }
  0x19   :  { %411 = vmatpush1.bf16.msra.mxu1 %v769_v16  ;;  %v38_v33 = vld [vmem:[%s967_s0 + $0x18] sm:$0xff]  ;;  %v36_v37 = vld [vmem:[%s967_s0 + $0x8] sm:$0xff]  ;;  %v37_v47 = vld [vmem:[%s967_s0 + $0x10] sm:$0xff] }
  0x1a   :  { %412 = vmatprep.subr.bf16.mxu1 %v772_v17  ;;  %v42_v34 = vld [vmem:[%s967_s0 + $0x38] sm:$0xff]  ;;  %v774_v38 = vld [vmem:[#allocation2 + $0xe0] ss:$8 sps:$4 sm:$0xff]   ;;  %v802_v44 = vld [vmem:[#allocation2 + $0x184] ss:$8 sps:$4 sm:$0xff]  }
  0x1b   :  { %370 = vmatpush1.bf16.msra.mxu0 %v745_v9  ;;  %v46_v36 = vpack.c.bf16 %v42_v34, %v38_v33  ;;  %v776_v39 = vld [vmem:[#allocation2 + $0xd4] ss:$8 sps:$4 sm:$0xff]   ;;  %v40_v40 = vld [vmem:[%s967_s0 + $0x28] sm:$0xff]  ;;  %v780_v43 = vld [vmem:[#allocation2 + $0xd0] ss:$8 sps:$4 sm:$0xff]  }
  0x1c   :  { %371 = vmatprep.subr.bf16.mxu0 %v746_v10  ;;  %v799_v41 = vld [vmem:[#allocation2 + $0x100] ss:$8 sps:$4 sm:$0xff]   ;;  %v44_v42 = vpack.c.bf16 %v40_v40, %v36_v37  ;;  %v782_v45 = vld [vmem:[#allocation2 + $0xc4] ss:$8 sps:$4 sm:$0xff]   ;;  %v41_v48 = vld [vmem:[%s967_s0 + $0x30] sm:$0xff] }
  0x1d   :  { %413 = vmatpush1.bf16.msra.mxu1 %v775_v20  ;;  %691 = vmatprep.mubr.msk.bf16.mxu1 %vm359_vm0, %v46_v36  ;;  %v805_v46 = vld [vmem:[#allocation2 + $0x180] ss:$8 sps:$4 sm:$0xff]   ;;  %v809_v50 = vld [vmem:[%s970_s3 + $0x78] sm:$0xff]   ;;  %v45_v53 = vpack.c.bf16 %v41_v48, %v37_v47  ;;  %v811_v54 = vld [vmem:[%s970_s3 + $0x70] sm:$0xff]  }
  0x1e   :  { %414 = vmatprep.subr.bf16.mxu1 %v778_v21  ;;  %395 = vmatprep.mubr.bf16.mxu0 %v44_v42  ;;  %v786_v49 = vld [vmem:[#allocation2 + $0xc0] ss:$8 sps:$4 sm:$0xff]   ;;  %v788_v51 = vld [vmem:[#allocation2 + $0xb4] ss:$8 sps:$4 sm:$0xff]   ;;  %v792_v55 = vld [vmem:[#allocation2 + $0xb0] ss:$8 sps:$4 sm:$0xff]  }
  0x1f   :  { %372 = vmatpush1.bf16.msra.mxu0 %v748_v13  ;;  %v810_v52 = vld [vmem:[%s970_s3 + $0x38] sm:$0xff]   ;;  %v794_v56 = vld [vmem:[#allocation2 + $0xa4] ss:$8 sps:$4 sm:$0xff]   ;;  %v812_v57 = vld [vmem:[%s970_s3 + $0x30] sm:$0xff]  }
  0x20   :  { %373 = vmatprep.subr.bf16.mxu0 %v749_v14  ;;  %v813_v58 = vld [vmem:[%s970_s3 + $0x68] sm:$0xff]   ;;  %v800_v60 = vld [vmem:[#allocation2 + $0x94] ss:$8 sps:$4 sm:$0xff]   ;;  %v804_v62 = vld [vmem:[#allocation2 + $0x90] ss:$8 sps:$4 sm:$0xff]   ;;  %v99_v14 = vlaneseq }
  0x21   :  { %415 = vmatpush1.bf16.msra.mxu1 %v781_v24  ;;  %v798_v59 = vld [vmem:[#allocation2 + $0xa0] ss:$8 sps:$4 sm:$0xff]   ;;  %v806_v63 = vld [vmem:[#allocation2 + $0x84] ss:$8 sps:$4 sm:$0xff]   ;;  %v817_v6 = vld [vmem:[%s970_s3 + $0x58] sm:$0xff]  }
  0x22   :  { %416 = vmatprep.subr.bf16.mxu1 %v784_v25  ;;  %v814_v61 = vld [vmem:[%s970_s3 + $0x28] sm:$0xff]   ;;  %v35_v1 = vld [vmem:[%s967_s0] sm:$0xff]  ;;  %v818_v7 = vld [vmem:[%s970_s3 + $0x18] sm:$0xff]   ;;  %v100_v15 = vshrl.u32 %v99_v14, 7 }
  0x23   :  { %374 = vmatpush1.bf16.msra.mxu0 %v751_v18  ;;  %v808_v0 = vld [vmem:[#allocation2 + $0x80] ss:$8 sps:$4 sm:$0xff]   ;;  %v819_v8 = vld [vmem:[%s970_s3 + $0x50] sm:$0xff]  }
  0x24   :  { %375 = vmatprep.subr.bf16.mxu0 %v752_v19  ;;  %v39_v2 = vld [vmem:[%s967_s0 + $0x20] sm:$0xff]  ;;  %v820_v9 = vld [vmem:[%s970_s3 + $0x10] sm:$0xff]   ;;  %v821_v10 = vld [vmem:[%s970_s3 + $0x48] sm:$0xff]   ;;  %v105_v16 = vsub.s32 1, %v100_v15  ;;  %v101_v18 = vsub.s32 0, %v100_v15 }
  0x25   :  { %417 = vmatpush1.bf16.msra.mxu1 %v787_v28  ;;  %v43_v3 = vpack.c.bf16 %v39_v2, %v35_v1  ;;  %v815_v4 = vld [vmem:[%s970_s3 + $0x60] sm:$0xff]   ;;  %v822_v11 = vld [vmem:[%s970_s3 + $0x8] sm:$0xff]  }
  0x26   :  { %418 = vmatprep.subr.bf16.mxu1 %v790_v29  ;;  %v816_v5 = vld [vmem:[%s970_s3 + $0x20] sm:$0xff]  }
  0x27   :  { %376 = vmatpush1.bf16.msra.mxu0 %v756_v22  ;;  %v823_v12 = vld [vmem:[%s970_s3 + $0x40] sm:$0xff]  }
  0x28   :  { %377 = vmatprep.subr.bf16.mxu0 %v758_v23  ;;  %v824_v13 = vld [vmem:[%s970_s3] sm:$0xff]  }
  0x29   :  { %419 = vmatpush1.bf16.msra.mxu1 %v793_v32  ;;  %v97_v19 = vld [vmem:[%s969_s2] sm:$0x3] }
  0x2a   :  { %420 = vmatprep.subr.bf16.mxu1 %v796_v35  ;;  %v106_v20 = vrot.slane %v97_v19, %v105_v16  ;;  %v102_v22 = vrot.slane %v97_v19, %v101_v18 }
  0x2b   :  { %378 = vmatpush1.bf16.msra.mxu0 %v762_v26 }
  0x2c   :  { %379 = vmatprep.subr.bf16.mxu0 %v764_v27 }
  0x2d   :  { %421 = vmatpush1.bf16.msra.mxu1 %v799_v41 }
  0x2e   :  { %436 = vmatprep.subr.bf16.mxu1 %v802_v44  ;;  %v692_v44 = vld [vmem:[%s971_s4] ss:$0 sm:$0xff] }
  0x2f   :  { %380 = vmatpush2.bf16.msra.mxu0 %v768_v30 }
  0x30   :  { %381 = vmatprep.subr.bf16.mxu0 %v770_v31 }
  0x31   :  { %437 = vmatpush2.bf16.msra.mxu1 %v805_v46 }
  0x32   :  { %709 = vmatprep.subr.bf16.mxu1 %v809_v50 }
  0x33   :  { %382 = vmatpush2.bf16.msra.mxu0 %v774_v38 }
  0x34   :  { %383 = vmatprep.subr.bf16.mxu0 %v776_v39  ;;  %439 = vmatmul.mubr.bf16.vlgmr.msra.gmra.mxu1 %v45_v53 }
  0x35   :  { %710 = vmatpush3.bf16.msra.mxu1 %v810_v52 }
  0x36   :  { %711 = vmatprep.subr.bf16.mxu1 %v811_v54 }
  0x37   :  { %384 = vmatpush2.bf16.msra.mxu0 %v780_v43 }
  0x38   :  { %385 = vmatprep.subr.bf16.mxu0 %v782_v45 }
  0x39   :  { %712 = vmatpush3.bf16.msra.mxu1 %v812_v57 }
  0x3a   :  { %713 = vmatprep.subr.bf16.mxu1 %v813_v58 }
  0x3b   :  { %386 = vmatpush2.bf16.msra.mxu0 %v786_v49 }
  0x3c   :  { %387 = vmatprep.subr.bf16.mxu0 %v788_v51 }
  0x3d   :  { %714 = vmatpush3.bf16.msra.mxu1 %v814_v61 }
  0x3e   :  { %715 = vmatprep.subr.bf16.mxu1 %v815_v4 }
  0x3f   :  { %388 = vmatpush2.bf16.msra.mxu0 %v792_v55 }
  0x40   :  { %389 = vmatprep.subr.bf16.mxu0 %v794_v56 }
  0x41   :  { %716 = vmatpush3.bf16.msra.mxu1 %v816_v5 }
  0x42   :  { %717 = vmatprep.subr.bf16.mxu1 %v817_v6 }
  0x43   :  { %390 = vmatpush2.bf16.msra.mxu0 %v798_v59 }
  0x44   :  { %391 = vmatprep.subr.bf16.mxu0 %v800_v60 }
  0x45   :  { %718 = vmatpush3.bf16.msra.mxu1 %v818_v7 }
  0x46   :  { %719 = vmatprep.subr.bf16.mxu1 %v819_v8 }
  0x47   :  { %392 = vmatpush2.bf16.msra.mxu0 %v804_v62 }
  0x48   :  { %393 = vmatprep.subr.bf16.mxu0 %v806_v63 }
  0x49   :  { %720 = vmatpush3.bf16.msra.mxu1 %v820_v9 }
  0x4a   :  { %721 = vmatprep.subr.bf16.mxu1 %v821_v10 }
  0x4b   :  { %394 = vmatpush2.bf16.msra.mxu0 %v808_v0 }
  0x4d   :  { %722 = vmatpush3.bf16.msra.mxu1 %v822_v11 }
  0x4e   :  { %396 = vmatmul.mubr.bf16.vlgmr.msra.gmra.mxu0 %v43_v3  ;;  %723 = vmatprep.subr.bf16.mxu1 %v823_v12 }
  0x51   :  { %724 = vmatpush3.bf16.msra.mxu1 %v824_v13 }
  0xf4   :  { %v440_v17 = vpop.f32.mrf.mxu1 }
  0xf6   :  { %v442_v21 = vpop.f32.mrf.mxu1 }
  0xf8   :  { %v444_v27 = vpop.f32.mrf.mxu1 }
  0xfa   :  { %v446_v35 = vpop.f32.mrf.mxu1 }
 0x10e   :  { %v397_v23 = vpop.f32.mrf.mxu0 }
 0x10f   :  { %v398_v26 = vadd.f32 %v397_v23, %v102_v22 }
 0x110   :  { %v399_v24 = vpop.f32.mrf.mxu0 }
 0x111   :  { %v400_v25 = vadd.f32 %v399_v24, %v106_v20  ;;  %v441_v34 = vadd.f32 %v440_v17, %v398_v26 }
 0x112   :  { %v401_v28 = vpop.f32.mrf.mxu0 }
 0x113   :  { %v402_v29 = vadd.f32 %v401_v28, %v102_v22  ;;  %v443_v31 = vadd.f32 %v442_v21, %v400_v25  ;;  %v449_v40 = vmax.f32 %v441_v34, 0.0 }
 0x114   :  { %v403_v30 = vpop.f32.mrf.mxu0 }
 0x115   :  { %v445_v32 = vadd.f32 %v444_v27, %v402_v29  ;;  %v404_v33 = vadd.f32 %v403_v30, %v106_v20  ;;  %v450_v38 = vmax.f32 %v443_v31, 0.0 }
 0x117   :  { %v447_v36 = vadd.f32 %v446_v35, %v404_v33  ;;  %v451_v37 = vmax.f32 %v445_v32, 0.0 }
 0x119   :  { %v452_v39 = vmax.f32 %v447_v36, 0.0  ;;  %v453_v42 = vpack.c.bf16 %v451_v37, %v449_v40 }
 0x11b   :  { %v454_v41 = vpack.c.bf16 %v452_v39, %v450_v38 }
 0x11d   :  { %622 = vmatprep.mubr.bf16.mxu1 %v454_v41 }
 0x11e   :  { %623 = vmatmul.mubr.bf16.vlgmr.msra.gmra.mxu1 %v453_v42 }
 0x1de   :  { %v725_v43 = vpop.f32.mrf.mxu1 }
 0x1e0   :  { %v726_v45 = vpop.f32.mrf.mxu1 }
 0x1e1   :  { %v727_v46 = vadd.f32 %v726_v45, %v725_v43 }
 0x1e2   :  { %v728_v47 = vpop.f32.mrf.mxu1 }
 0x1e3   :  { %v625_v48 = vadd.f32 %v727_v46, %v692_v44 }
 0x1e4   :  { %v729_v49 = vpop.f32.mrf.mxu1 }
 0x1e5   :  { %v631_v50 = vmax.f32 %v625_v48, 0.0  ;;  %v730_v51 = vadd.f32 %v729_v49, %v728_v47 }
 0x1e7   :  { %634 = vst.msk [vmem:[%s972_s5] sm:$0xff] %vm633_vm1, %v631_v50  ;;  %v628_v52 = vadd.f32 %v730_v51, %v692_v44 }
 0x1e9   :  { %v632_v53 = vmax.f32 %v628_v52, 0.0 }
 0x1eb   :  { %635 = vst.msk [vmem:[%s972_s5 + $0x8] sm:$0xff] %vm633_vm1, %v632_v53 }
 0x1ec   :  { %640 = vsyncpa [#allocation3], 1 }

</bundles_post_ra>
